<compile_context>
chip_gen: v7x
topology: tpu7x:2x2x1
jax: 0.10.0
libtpu: 0.0.40
codegen_flags: <defaults>
</compile_context>

<pallas_src>
import functools

import jax
import jax.numpy as jnp
from jax.experimental import pallas as pl
from jax.experimental.pallas import tpu as pltpu


def _mha_kernel(x_ref, w_ref, o_ref, *, nb_heads, head_size):
    """One batch element per grid step: all heads, fused QKV projection.

    x_ref : (1, T, C)             VMEM
    w_ref : (C, 3*nb_heads*H)     VMEM (constant block index -> fetched once)
    o_ref : (1, T, nb_heads*H)    VMEM (final concat layout, lane-dense store)
    """
    x = x_ref[0]                                                        # (T, C)
    # Single fused projection: Q/K/V for every head in one MXU pass.
    # The Q columns of w_ref are already pre-scaled by 1/sqrt(H).
    qkv = jnp.dot(x, w_ref[...], preferred_element_type=jnp.float32)   # (T, 3*NH*H)

    T = x.shape[0]
    row = jax.lax.broadcasted_iota(jnp.int32, (T, T), 0)
    col = jax.lax.broadcasted_iota(jnp.int32, (T, T), 1)
    causal = row >= col   # every causal row has >=1 live entry, so -inf mask is safe

    NH, H = nb_heads, head_size
    head_outs = []
    for h in range(NH):                        # static unroll over the few heads
        q = qkv[:, h * H:(h + 1) * H]                            # (T, H)  (pre-scaled)
        k = qkv[:, (NH + h) * H:(NH + h + 1) * H]                # (T, H)
        v = qkv[:, (2 * NH + h) * H:(2 * NH + h + 1) * H]        # (T, H)

        # q @ k^T via dot_general contracting the last dims (no explicit k.T).
        s = jax.lax.dot_general(
            q, k, dimension_numbers=(((1,), (1,)), ((), ())),
            preferred_element_type=jnp.float32)                  # (T, T)
        s = jnp.where(causal, s, -jnp.inf)

        # numerically-stable softmax along the last axis
        m = jnp.max(s, axis=-1, keepdims=True)
        e = jnp.exp(s - m)
        denom = jnp.sum(e, axis=-1, keepdims=True)
        p = e * pl.reciprocal(denom, approx=False)               # exact: keeps 1e-5 tolerance

        # TODO(synk): dropout on attention weights (rate=0.0 here, so identity).
        head_outs.append(jnp.dot(p, v, preferred_element_type=jnp.float32))  # (T, H)

    # One lane-dense (T, NH*H) store instead of NH masked 16-lane stores.
    o_ref[0] = jnp.concatenate(head_outs, axis=-1).astype(o_ref.dtype)


def multi_head_attention(x, wq, wk, wv):
    """x: (B, T, C); wq/wk/wv: (nb_heads, C, H). Returns (B, T, nb_heads*H)."""
    B, T, C = x.shape
    nb_heads, _, H = wq.shape
    scale = float(H) ** -0.5

    # One-time weight prep: fuse per-head projections into (C, 3*nb_heads*H)
    # with column layout [Q head 0..NH-1 | K head 0..NH-1 | V head 0..NH-1].
    # The attention scale is folded into the Q weights (constant fold, done
    # once at trace time — not an in-kernel op).
    def fuse(w):  # (NH, C, H) -> (C, NH*H)
        return jnp.transpose(w, (1, 0, 2)).reshape(C, nb_heads * H)

    w_qkv = jnp.concatenate([fuse(wq) * scale, fuse(wk), fuse(wv)], axis=-1)

    kernel = functools.partial(_mha_kernel, nb_heads=nb_heads, head_size=H)

    return pl.pallas_call(
        kernel,
        out_shape=jax.ShapeDtypeStruct((B, T, nb_heads * H), x.dtype),
        grid_spec=pltpu.PrefetchScalarGridSpec(
            num_scalar_prefetch=0,
            grid=(B,),   # >=2 parallel steps so both v7x TensorCores get work
            in_specs=[
                pl.BlockSpec((1, T, C), lambda b: (b, 0, 0)),              # x, per batch
                pl.BlockSpec((C, 3 * nb_heads * H), lambda b: (0, 0)),     # fused W, constant block -> single DMA
            ],
            out_specs=pl.BlockSpec((1, T, nb_heads * H), lambda b: (b, 0, 0)),
        ),
        compiler_params=pltpu.CompilerParams(
            dimension_semantics=("parallel",),
        ),
    )(x, w_qkv)


def _reference(x, wq, wk, wv):
    """Pure-JAX reference of the PyTorch forward (returns concat of heads)."""
    B, T, C = x.shape
    nb_heads, _, H = wq.shape
    scale = float(H) ** -0.5
    outs = []
    for h in range(nb_heads):
        q = x @ wq[h]
        k = x @ wk[h]
        v = x @ wv[h]
        s = (q @ jnp.swapaxes(k, -1, -2)) * scale
        mask = jnp.tril(jnp.ones((T, T), dtype=bool))
        s = jnp.where(mask, s, -jnp.inf)
        p = jax.nn.softmax(s, axis=-1)
        outs.append(p @ v)
    return jnp.concatenate(outs, axis=-1)


if __name__ == "__main__":
    # Module hyper-params (synthetic, deterministic init)
    B, T = 2, 8                   # batch, block_size (<= max_block_size)
    C = 32                        # dim_token_embedding
    H = 16                        # head_size
    NB_HEADS = 4
    MAX_BLOCK_SIZE = 16

    key = jax.random.PRNGKey(0)
    kx, kq, kk, kv = jax.random.split(key, 4)

    x = jax.random.normal(kx, (B, T, C), dtype=jnp.float32)

    # nn.Linear(C, H, bias=False) default init: U(-1/sqrt(C), 1/sqrt(C)); stored
    # here already transposed so that y = x @ W.
    bound = 1.0 / (C ** 0.5)
    wq = jax.random.uniform(kq, (NB_HEADS, C, H), jnp.float32, -bound, bound)
    wk = jax.random.uniform(kk, (NB_HEADS, C, H), jnp.float32, -bound, bound)
    wv = jax.random.uniform(kv, (NB_HEADS, C, H), jnp.float32, -bound, bound)

    out = multi_head_attention(x, wq, wk, wv)
    out = jax.block_until_ready(out)

    ref = _reference(x, wq, wk, wv)
    assert out.shape == (B, T, NB_HEADS * H), out.shape
    assert jnp.allclose(out, ref, atol=1e-5, rtol=1e-5), "mismatch vs reference"

    print("KERNEL_OK")
</pallas_src>

<mosaic_0001>
module attributes {stable_mosaic.version = 11 : i64} {
  func.func @_mha_kernel(%arg0: i32, %arg1: memref<1x8x32xf32, #tpu.memory_space<vmem>>, %arg2: memref<32x192xf32, #tpu.memory_space<vmem>>, %arg3: memref<1x8x64xf32, #tpu.memory_space<vmem>>) attributes {dimension_semantics = [#tpu.dimension_semantics<parallel>], iteration_bounds = array<i64: 2>, scalar_prefetch = 0 : i64, scratch_operands = 0 : i64, tpu.core_type = #tpu.core_type<tc>, window_params = [{transform_indices = @transform_0, window_bounds = array<i64: 1, 8, 32>}, {pipeline_mode = #tpu.pipeline_mode<synchronous>, transform_indices = @transform_1, window_bounds = array<i64: 32, 192>}, {transform_indices = @transform_2, window_bounds = array<i64: 1, 8, 64>}]} {
    %c0 = arith.constant 0 : index
    %c0_0 = arith.constant 0 : index
    %c0_1 = arith.constant 0 : index
    %0 = vector.load %arg1[%c0, %c0_0, %c0_1] : memref<1x8x32xf32, #tpu.memory_space<vmem>>, vector<1x8x32xf32>
    %1 = vector.shape_cast %0 : vector<1x8x32xf32> to vector<8x32xf32>
    %c0_2 = arith.constant 0 : index
    %c0_3 = arith.constant 0 : index
    %2 = vector.load %arg2[%c0_2, %c0_3] : memref<32x192xf32, #tpu.memory_space<vmem>>, vector<32x192xf32>
    %cst = arith.constant dense<0.000000e+00> : vector<8x192xf32>
    %3 = tpu.matmul %1, %2, %cst {dimension_numbers = #tpu.dot_dimension_numbers<[1], [0], [0], [1], [0, 0, 1, 1], [], []>} : vector<8x32xf32>, vector<32x192xf32>, vector<8x192xf32> -> vector<8x192xf32>
    %4 = tpu.iota {dimensions = array<i32: 0>} : vector<8x8xi32>
    %5 = tpu.iota {dimensions = array<i32: 1>} : vector<8x8xi32>
    %6 = arith.cmpi sge, %4, %5 : vector<8x8xi32>
    %7 = vector.extract_strided_slice %3 {offsets = [0, 0], sizes = [8, 16], strides = [1, 1]} : vector<8x192xf32> to vector<8x16xf32>
    %8 = vector.extract_strided_slice %3 {offsets = [0, 64], sizes = [8, 16], strides = [1, 1]} : vector<8x192xf32> to vector<8x16xf32>
    %9 = vector.extract_strided_slice %3 {offsets = [0, 128], sizes = [8, 16], strides = [1, 1]} : vector<8x192xf32> to vector<8x16xf32>
    %cst_4 = arith.constant dense<0.000000e+00> : vector<8x8xf32>
    %10 = tpu.matmul %7, %8, %cst_4 {dimension_numbers = #tpu.dot_dimension_numbers<[1], [1], [0], [0], [0, 0, 1, 0], [], []>} : vector<8x16xf32>, vector<8x16xf32>, vector<8x8xf32> -> vector<8x8xf32>
    %cst_5 = arith.constant 0xFF800000 : f32
    %11 = vector.broadcast %cst_5 : f32 to vector<8x8xf32>
    %12 = arith.select %6, %10, %11 : vector<8x8xi1>, vector<8x8xf32>
    %cst_6 = arith.constant dense<0xFF800000> : vector<8xf32>
    %13 = vector.multi_reduction <maximumf>, %12, %cst_6 [1] : vector<8x8xf32> to vector<8xf32>
    %14 = vector.shape_cast %13 : vector<8xf32> to vector<8x1xf32>
    %15 = vector.broadcast %14 : vector<8x1xf32> to vector<8x8xf32>
    %16 = arith.subf %12, %15 : vector<8x8xf32>
    %17 = math.exp %16 : vector<8x8xf32>
    %cst_7 = arith.constant dense<0.000000e+00> : vector<8xf32>
    %18 = vector.multi_reduction <add>, %17, %cst_7 [1] : vector<8x8xf32> to vector<8xf32>
    %19 = vector.shape_cast %18 : vector<8xf32> to vector<8x1xf32>
    %20 = tpu.reciprocal %19 : vector<8x1xf32> -> vector<8x1xf32>
    %21 = vector.broadcast %20 : vector<8x1xf32> to vector<8x8xf32>
    %22 = arith.mulf %17, %21 : vector<8x8xf32>
    %cst_8 = arith.constant dense<0.000000e+00> : vector<8x16xf32>
    %23 = tpu.matmul %22, %9, %cst_8 {dimension_numbers = #tpu.dot_dimension_numbers<[1], [0], [0], [1], [0, 0, 1, 1], [], []>} : vector<8x8xf32>, vector<8x16xf32>, vector<8x16xf32> -> vector<8x16xf32>
    %24 = vector.extract_strided_slice %3 {offsets = [0, 16], sizes = [8, 16], strides = [1, 1]} : vector<8x192xf32> to vector<8x16xf32>
    %25 = vector.extract_strided_slice %3 {offsets = [0, 80], sizes = [8, 16], strides = [1, 1]} : vector<8x192xf32> to vector<8x16xf32>
    %26 = vector.extract_strided_slice %3 {offsets = [0, 144], sizes = [8, 16], strides = [1, 1]} : vector<8x192xf32> to vector<8x16xf32>
    %cst_9 = arith.constant dense<0.000000e+00> : vector<8x8xf32>
    %27 = tpu.matmul %24, %25, %cst_9 {dimension_numbers = #tpu.dot_dimension_numbers<[1], [1], [0], [0], [0, 0, 1, 0], [], []>} : vector<8x16xf32>, vector<8x16xf32>, vector<8x8xf32> -> vector<8x8xf32>
    %cst_10 = arith.constant 0xFF800000 : f32
    %28 = vector.broadcast %cst_10 : f32 to vector<8x8xf32>
    %29 = arith.select %6, %27, %28 : vector<8x8xi1>, vector<8x8xf32>
    %cst_11 = arith.constant dense<0xFF800000> : vector<8xf32>
    %30 = vector.multi_reduction <maximumf>, %29, %cst_11 [1] : vector<8x8xf32> to vector<8xf32>
    %31 = vector.shape_cast %30 : vector<8xf32> to vector<8x1xf32>
    %32 = vector.broadcast %31 : vector<8x1xf32> to vector<8x8xf32>
    %33 = arith.subf %29, %32 : vector<8x8xf32>
    %34 = math.exp %33 : vector<8x8xf32>
    %cst_12 = arith.constant dense<0.000000e+00> : vector<8xf32>
    %35 = vector.multi_reduction <add>, %34, %cst_12 [1] : vector<8x8xf32> to vector<8xf32>
    %36 = vector.shape_cast %35 : vector<8xf32> to vector<8x1xf32>
    %37 = tpu.reciprocal %36 : vector<8x1xf32> -> vector<8x1xf32>
    %38 = vector.broadcast %37 : vector<8x1xf32> to vector<8x8xf32>
    %39 = arith.mulf %34, %38 : vector<8x8xf32>
    %cst_13 = arith.constant dense<0.000000e+00> : vector<8x16xf32>
    %40 = tpu.matmul %39, %26, %cst_13 {dimension_numbers = #tpu.dot_dimension_numbers<[1], [0], [0], [1], [0, 0, 1, 1], [], []>} : vector<8x8xf32>, vector<8x16xf32>, vector<8x16xf32> -> vector<8x16xf32>
    %41 = vector.extract_strided_slice %3 {offsets = [0, 32], sizes = [8, 16], strides = [1, 1]} : vector<8x192xf32> to vector<8x16xf32>
    %42 = vector.extract_strided_slice %3 {offsets = [0, 96], sizes = [8, 16], strides = [1, 1]} : vector<8x192xf32> to vector<8x16xf32>
    %43 = vector.extract_strided_slice %3 {offsets = [0, 160], sizes = [8, 16], strides = [1, 1]} : vector<8x192xf32> to vector<8x16xf32>
    %cst_14 = arith.constant dense<0.000000e+00> : vector<8x8xf32>
    %44 = tpu.matmul %41, %42, %cst_14 {dimension_numbers = #tpu.dot_dimension_numbers<[1], [1], [0], [0], [0, 0, 1, 0], [], []>} : vector<8x16xf32>, vector<8x16xf32>, vector<8x8xf32> -> vector<8x8xf32>
    %cst_15 = arith.constant 0xFF800000 : f32
    %45 = vector.broadcast %cst_15 : f32 to vector<8x8xf32>
    %46 = arith.select %6, %44, %45 : vector<8x8xi1>, vector<8x8xf32>
    %cst_16 = arith.constant dense<0xFF800000> : vector<8xf32>
    %47 = vector.multi_reduction <maximumf>, %46, %cst_16 [1] : vector<8x8xf32> to vector<8xf32>
    %48 = vector.shape_cast %47 : vector<8xf32> to vector<8x1xf32>
    %49 = vector.broadcast %48 : vector<8x1xf32> to vector<8x8xf32>
    %50 = arith.subf %46, %49 : vector<8x8xf32>
    %51 = math.exp %50 : vector<8x8xf32>
    %cst_17 = arith.constant dense<0.000000e+00> : vector<8xf32>
    %52 = vector.multi_reduction <add>, %51, %cst_17 [1] : vector<8x8xf32> to vector<8xf32>
    %53 = vector.shape_cast %52 : vector<8xf32> to vector<8x1xf32>
    %54 = tpu.reciprocal %53 : vector<8x1xf32> -> vector<8x1xf32>
    %55 = vector.broadcast %54 : vector<8x1xf32> to vector<8x8xf32>
    %56 = arith.mulf %51, %55 : vector<8x8xf32>
    %cst_18 = arith.constant dense<0.000000e+00> : vector<8x16xf32>
    %57 = tpu.matmul %56, %43, %cst_18 {dimension_numbers = #tpu.dot_dimension_numbers<[1], [0], [0], [1], [0, 0, 1, 1], [], []>} : vector<8x8xf32>, vector<8x16xf32>, vector<8x16xf32> -> vector<8x16xf32>
    %58 = vector.extract_strided_slice %3 {offsets = [0, 48], sizes = [8, 16], strides = [1, 1]} : vector<8x192xf32> to vector<8x16xf32>
    %59 = vector.extract_strided_slice %3 {offsets = [0, 112], sizes = [8, 16], strides = [1, 1]} : vector<8x192xf32> to vector<8x16xf32>
    %60 = vector.extract_strided_slice %3 {offsets = [0, 176], sizes = [8, 16], strides = [1, 1]} : vector<8x192xf32> to vector<8x16xf32>
    %cst_19 = arith.constant dense<0.000000e+00> : vector<8x8xf32>
    %61 = tpu.matmul %58, %59, %cst_19 {dimension_numbers = #tpu.dot_dimension_numbers<[1], [1], [0], [0], [0, 0, 1, 0], [], []>} : vector<8x16xf32>, vector<8x16xf32>, vector<8x8xf32> -> vector<8x8xf32>
    %cst_20 = arith.constant 0xFF800000 : f32
    %62 = vector.broadcast %cst_20 : f32 to vector<8x8xf32>
    %63 = arith.select %6, %61, %62 : vector<8x8xi1>, vector<8x8xf32>
    %cst_21 = arith.constant dense<0xFF800000> : vector<8xf32>
    %64 = vector.multi_reduction <maximumf>, %63, %cst_21 [1] : vector<8x8xf32> to vector<8xf32>
    %65 = vector.shape_cast %64 : vector<8xf32> to vector<8x1xf32>
    %66 = vector.broadcast %65 : vector<8x1xf32> to vector<8x8xf32>
    %67 = arith.subf %63, %66 : vector<8x8xf32>
    %68 = math.exp %67 : vector<8x8xf32>
    %cst_22 = arith.constant dense<0.000000e+00> : vector<8xf32>
    %69 = vector.multi_reduction <add>, %68, %cst_22 [1] : vector<8x8xf32> to vector<8xf32>
    %70 = vector.shape_cast %69 : vector<8xf32> to vector<8x1xf32>
    %71 = tpu.reciprocal %70 : vector<8x1xf32> -> vector<8x1xf32>
    %72 = vector.broadcast %71 : vector<8x1xf32> to vector<8x8xf32>
    %73 = arith.mulf %68, %72 : vector<8x8xf32>
    %cst_23 = arith.constant dense<0.000000e+00> : vector<8x16xf32>
    %74 = tpu.matmul %73, %60, %cst_23 {dimension_numbers = #tpu.dot_dimension_numbers<[1], [0], [0], [1], [0, 0, 1, 1], [], []>} : vector<8x8xf32>, vector<8x16xf32>, vector<8x16xf32> -> vector<8x16xf32>
    %75 = tpu.concatenate %23, %40, %57, %74 in 1 : vector<8x16xf32>, vector<8x16xf32>, vector<8x16xf32>, vector<8x16xf32> -> vector<8x64xf32>
    %c0_24 = arith.constant 0 : index
    %c0_25 = arith.constant 0 : index
    %c0_26 = arith.constant 0 : index
    %76 = vector.load %arg3[%c0_24, %c0_25, %c0_26] : memref<1x8x64xf32, #tpu.memory_space<vmem>>, vector<1x8x64xf32>
    %77 = vector.shape_cast %76 : vector<1x8x64xf32> to vector<8x64xf32>
    %78 = vector.shape_cast %75 : vector<8x64xf32> to vector<1x8x64xf32>
    tpu.vector_store %arg3[%c0_24, %c0_25, %c0_26], %78 {strides = array<i32>} : memref<1x8x64xf32, #tpu.memory_space<vmem>>, vector<1x8x64xf32>,
    return
  }
  func.func @transform_0(%arg0: i32) -> (i32, i32, i32) {
    %c0_i32 = arith.constant 0 : i32
    %c0_i32_0 = arith.constant 0 : i32
    %c0_i32_1 = arith.constant 0 : i32
    return %arg0, %c0_i32, %c0_i32_0 : i32, i32, i32
  }
  func.func @transform_1(%arg0: i32) -> (i32, i32) {
    %c0_i32 = arith.constant 0 : i32
    %c0_i32_0 = arith.constant 0 : i32
    %c0_i32_1 = arith.constant 0 : i32
    return %c0_i32, %c0_i32_0 : i32, i32
  }
  func.func @transform_2(%arg0: i32) -> (i32, i32, i32) {
    %c0_i32 = arith.constant 0 : i32
    %c0_i32_0 = arith.constant 0 : i32
    %c0_i32_1 = arith.constant 0 : i32
    return %arg0, %c0_i32, %c0_i32_0 : i32, i32, i32
  }
}

</mosaic_0001>

<bundles_post_ra>
// kernel: tpu_custom_call.1
= control target key start
LH: loop header
LB: loop body
LE: loop exit
PB: predicated region body
PF: predicated region fallthrough
CT: control target
= control target key end

     0   :  { %7 = vsyncpa [#allocation3], 0  ;;  %s1642_s0 = inlined_call_operand.hbm [shape: f32[2,8,32], index: 0, kind: input, shape index: {}]   ;;  %s1643_s1 = inlined_call_operand.hbm [shape: f32[32,192], index: 1, kind: input, shape index: {}]   ;;  %s1644_s2 = inlined_call_operand.hbm [shape: f32[2,8,64], index: 2, kind: output, shape index: {}]  }
   0x1   :  { %9 = vsyncpa [#allocation3 + $0x1], 0 }
   0x2   :  { %10 = vsyncpa [#allocation6], 0 }
   0x3   :  { %11 = vsyncpa [#allocation4], 0 }
   0x4   :  { %13 = vsyncpa [#allocation4 + $0x1], 0  ;;  %s1372_s9 = smov 0   ;;  %s1374_s10 = smov 0  }
   0x5   :  { %s1376_s11 = smov 0   ;;  %s1378_s12 = smov 0  }
   0x6 LB: > { %s1393_s13 = sadd.s32 4294967295, %s1341_s12   ;;  %s1038_s14 = sadd.s32 4294967294, %s1341_s12   ;;  %s1341_s12 = sphi %s1378_s12, %s1664_s12   ;;  %s1337_s11 = sphi %s1376_s11, %s1663_s11   ;;  %s1333_s10 = sphi %s1374_s10, %s1662_s10   ;;  %s1329_s9 = sphi %s1372_s9, %s1661_s9  }
   0x7   : > { %p39_p0 = scmp.ne.s32.totalorder %s1333_s10, %s1329_s9  ;;  %p1645_p1 = scmp.eq.s32.totalorder %s1393_s13, 0 }
   0x8   : > { %p90_p3 = scmp.eq.s32.totalorder %s1038_s14, 1  ;;  %p1039_p5 = scmp.ge.s32.totalorder %s1341_s12, 1 }
   0x9   : > { %p1402_p4 = por %p1645_p1, %p39_p0  ;;  %p97_p7 = scmp.lt.s32.totalorder %s1341_s12, 3 }
   0xa   : > { %p1407_p6 = por %p90_p3, %p39_p0  ;;  %s1343_s18 = smov [#allocation5]  }
   0xb   : > { %s1648_s15 = scalar_select %p1402_p4, 1, 0 }
   0xc   : > { %s1649_s16 = scalar_select %p1407_p6, 1, 0 }
   0xd   : > { %p1412_p8 = pnand %p1039_p5, %p97_p7  ;;  %s109_s19 = sshll.u32 %s1343_s18, 4  ;;  %s1416_s19 = int_to_ptr.vmem [resolvable:$true] %s109_s19 }
   0xe   : > { %s1428_s21 = sadd.s32 1, %s1341_s12   ;;  %s26_s22 = sadd.s32 1, %s1337_s11 }
   0xf   : > { %s1650_s17 = scalar_select %p1412_p8, 1, 0 }
  0x10   : > { %p1137_p9 = pneg %p1412_p8  ;;  %s23_s23 = ssub.s32 %s1341_s12, %s1428_s21 }
  0x11   : > { %s1213_s26 = scalar_lea.hbm %s1643_s1, 1024 }
  0x12   : > { %p1423_p11 = pnand %p1137_p9, %p1645_p1  ;;  %p1214_p12 = scmp.ne.s32.totalorder %s1643_s1, %s1213_s26 }
  0x13   : > { %p1220_p5 = scmp.lt.u32.totalorder %s1213_s26, %s1643_s1 }
  0x14   : > { %p1215_p13 = pneg %p1423_p11 }
  0x16   : > { %p1216_p0 = pnand %p1215_p13, %p1214_p12 }
  0x18   : > { %p1217_p3 = pneg %p1216_p0 }
  0x1a   : > { %p1222_p7 = pnand %p1220_p5, %p1217_p3 }
  0x1c   : > { %1225 = shalt.err (!%p1222_p7)
}
  0x1d   : > { %s1226_s3 = scalar_lea.vmem %s1416_s19, 1024  ;;  %p1234_p2 = scmp.lt.s32.totalorder %s1416_s19, %s1416_s19 }
  0x1e   : > { %p1227_p9 = scmp.ne.s32.totalorder %s1416_s19, %s1226_s3  ;;  %p1235_p6 = scmp.lt.s32.totalorder %s1226_s3, %s1226_s3 }
  0x20   : > { %p1229_p10 = pnand %p1227_p9, %p1215_p13  ;;  %p1236_p4 = por %p1235_p6, %p1234_p2 }
  0x22   : > { %p1230_p1 = pneg %p1229_p10 }
  0x24   : > { %p1237_p8 = pnand %p1236_p4, %p1230_p1 }
  0x26   : > { %1240 = shalt.err (!%p1237_p8)
}
  0x27   : > { %s1344_s4 = smov 256   ;;  %s1345_s5 = smov 16  }
  0x28   : > { %1140 = dma.hbm_to_vmem [thread:$0]  (!%p1423_p11), %s1643_s1, 1024, %s1416_s19, [#allocation6], %s1344_s4, %s1344_s4, %s1345_s5  }
  0x29   : > { %p24_p2 = scmp.eq.s32.totalorder %s23_s23, 0  ;;  %p33_p1 = scmp.ne.s32.totalorder %s1337_s11, %s1333_s10 }
  0x2a   : > { %p34_p4 = scmp.eq.s32.totalorder %s1341_s12, 0  ;;  %p1150_p6 = scmp.lt.s32.totalorder %s1341_s12, 2 }
  0x2b   : > { %s1459_s8 = scalar_select %p24_p2, %s1337_s11, %s26_s22  }
  0x2c   : > { %p35_p8 = por %p34_p4, %p33_p1  ;;  %p1652_p10 = scmp.eq.s32.totalorder %s1393_s13, 1 }
  0x2d   : > { %s123_s18 = sand.u32 1, %s1337_s11   ;;  %s1043_s24 = sshll.u32 %s1341_s12, 7 }
  0x2e   : > { %p1463_p12 = por %p1652_p10, %p33_p1  ;;  %s1042_s25 = sshll.u32 %s123_s18, 3 }
  0x2f   : > { %s1472_s27 = scalar_lea.hbm %s1642_s0, %s1043_s24  ;;  %s127_s19 = scalar_lea.vmem [#allocation2], %s1042_s25 }
  0x30   : > { %s134_s22 = sshll.u32 %s127_s19, 4  ;;  %p1474_p11 = pnand %p1150_p6, %p35_p8  ;;  %s1478_s22 = int_to_ptr.vmem [resolvable:$true] %s134_s22 }
  0x31   : > { %s124_s28 = scalar_lea.sflag [#allocation3], %s123_s18  ;;  %s1241_s29 = scalar_lea.hbm %s1472_s27, 128 }
  0x32   : > { %p1242_p13 = scmp.ne.s32.totalorder %s1472_s27, %s1241_s29  ;;  %p1243_p0 = pneg %p1474_p11 }
  0x33   : > { %s1246_s4 = scalar_lea.hbm %s1642_s0, 256  ;;  %p1247_p7 = scmp.lt.u32.totalorder %s1472_s27, %s1642_s0 }
  0x34   : > { %p1244_p3 = pnand %p1243_p0, %p1242_p13  ;;  %p1248_p9 = scmp.lt.u32.totalorder %s1246_s4, %s1241_s29 }
  0x35   : > { %p1250_p1 = scmp.lt.u32.totalorder %s1241_s29, %s1472_s27 }
  0x36   : > { %p1245_p5 = pneg %p1244_p3  ;;  %p1249_p2 = por %p1248_p9, %p1247_p7 }
  0x38   : > { %p1251_p4 = por %p1250_p1, %p1249_p2 }
  0x3a   : > { %p1252_p6 = pnand %p1251_p4, %p1245_p5 }
  0x3c   : > { %1255 = shalt.err (!%p1252_p6)
}
  0x3d   : > { %s1256_s7 = scalar_lea.vmem %s1478_s22, 128  ;;  %s1346_s18 = smov [#allocation2]  }
  0x3e   : > { %p1257_p8 = scmp.ne.s32.totalorder %s1478_s22, %s1256_s7  ;;  %s1261_s24 = sshll.u32 %s1346_s18, 4  ;;  %s1262_s24 = int_to_ptr.vmem [resolvable:$false] %s1261_s24 }
  0x3f   : > { %s1263_s25 = scalar_lea.vmem %s1262_s24, 256  ;;  %p1264_p3 = scmp.lt.s32.totalorder %s1478_s22, %s1262_s24 }
  0x40   : > { %p1259_p10 = pnand %p1257_p8, %p1243_p0  ;;  %p1265_p7 = scmp.lt.s32.totalorder %s1263_s25, %s1256_s7 }
  0x42   : > { %p1260_p13 = pneg %p1259_p10  ;;  %p1266_p9 = por %p1265_p7, %p1264_p3 }
  0x44   : > { %p1267_p2 = pnand %p1266_p9, %p1260_p13 }
  0x46   : > { %1270 = shalt.err (!%p1267_p2)
}
  0x47   : > { %1144 = dma.hbm_to_vmem [thread:$0]  (!%p1474_p11), %s1472_s27, 128, %s1478_s22, %s124_s28  }
  0x48   : > { %p1655_p5 = scmp.ne.s32.totalorder %s1650_s17, 0 }
  0x49   : > { %s1508_s20 = sand.u32 (!%p1655_p5), 1, %s1333_s10   ;;  %p1656_p0 = scmp.ne.s32.totalorder (!%p1655_p5), %s1648_s15, 0 }
  0x4a   : > { %143 = sbr.rel (%p1655_p5) target bundleno = 1352 (0x548), region = 28  ;;  %s1045_s26 = sshll.u32 (!%p1655_p5), %s1508_s20, 3 }
  0x4b   : > { %s146_s19 = scalar_lea.sflag (!%p1655_p5), [#allocation3], %s1508_s20  ;;  %s149_s29 = scalar_lea.vmem (!%p1655_p5), [#allocation2], %s1045_s26 }
  0x51   : > { %1316 = dma.done.wait (%p1656_p0), %s146_s19, 128  }
  0x52   : > { %1318 = vsyncadd (%p1656_p0), %s146_s19, 4294967168  ;;  %p1657_p11 = scmp.eq.s32.totalorder %s1393_s13, 0 }
  0x54   : > { %1320 = dma.done.wait (%p1657_p11), [#allocation6], 1024   ;;  %p1658_p1 = pmov %p1657_p11 }
  0x55   : > { %v1347_v0 = vmov 0.0   ;;  %v176_v1 = vld [vmem:[#allocation5 + $0x8] sm:$0xff]  ;;  %v178_v2 = vld [vmem:[#allocation5 + $0x18] sm:$0xff]  ;;  %v175_v3 = vld [vmem:[#allocation5] sm:$0xff]  ;;  %vm183_vm0 = vcmask 261120   ;;  %vm1348_vm1 = vmmov 0   ;;  %v258_v23 = vlaneseq }
  0x56   : > { %1322 = vsyncadd (%p1658_p1), [#allocation6], 4294966272  ;;  %251 = vmatprep.mubr.f32.mxu0 %v1347_v0  ;;  %1081 = vmatprep.subr.mxu1 %v1347_v0  ;;  %v1121_v4 = vpack.c.bf16 %v178_v2, %v176_v1  ;;  %v177_v5 = vld [vmem:[#allocation5 + $0x10] sm:$0xff]  ;;  %v180_v6 = vld [vmem:[#allocation5 + $0x28] sm:$0xff]  ;;  %s1349_s15 = smov 112   ;;  %s1350_s17 = smov 64  }
  0x57   : > { %v182_v7 = vld [vmem:[#allocation5 + $0x38] sm:$0xff]  ;;  %v1123_v8 = vpack.c.bf16 %v177_v5, %v175_v3  ;;  %v179_v10 = vld [vmem:[#allocation5 + $0x20] sm:$0xff]  ;;  %v181_v11 = vld [vmem:[#allocation5 + $0x30] sm:$0xff]  ;;  %1083 = vmatprep.mubr.msk.f32.mxu1 %vm1348_vm1, %v1347_v0  ;;  %s1351_s27 = smov 32   ;;  %s1352_s22 = smov 48   ;;  %vm266_vm2 = vcmask 130048  }
  0x58   : > { %v1125_v9 = vpack.c.bf16 %v182_v7, %v180_v6  ;;  %1122 = vmatprep.subr.bf16.mxu0 %v1121_v4  ;;  %v1127_v12 = vpack.c.bf16 %v181_v11, %v179_v10  ;;  %v174_v13 = vld [vmem:[%s149_s29] sm:$0xff]  ;;  %s1353_s23 = smov 16   ;;  %s1354_s28 = smov 96   ;;  %v259_v24 = vshrl.u32 %v258_v23, 7  ;;  %v261_v25 = vand.u32 127, %v258_v23 }
  0x59   : > { %1124 = vmatpush1.bf16.msra.mxu0 %v1123_v8  ;;  %s1355_s30 = smov 80   ;;  %vm342_vm4 = vcmask 64512   ;;  %s1062_s3 = sshll.u32 %s1393_s13, 7  ;;  %vm940_vm5 = vcmask 392192   ;;  %vm942_vm6 = vcmask 523264  }
  0x5a   : > { %1126 = vmatprep.subr.bf16.mxu0 %v1125_v9  ;;  %vm262_vm3 = vcmp.ge.s32.totalorder %v259_v24, %v261_v25  ;;  %s173_s4 = scalar_lea.vmem [#allocation7], %s1045_s26  ;;  %s1598_s18 = scalar_lea.hbm %s1644_s2, %s1062_s3 }
  0x5b   : > { %s958_s5 = sshll.u32 %s173_s4, 4  ;;  %s945_s13 = scalar_lea.sflag [#allocation4], %s1508_s20  ;;  %s1600_s5 = int_to_ptr.vmem [resolvable:$true] %s958_s5 }
  0x5c   : > { %s1271_s24 = scalar_lea.vmem %s1600_s5, 128  ;;  %s1356_s25 = smov [#allocation7]  }
  0x5d   : > { %1128 = vmatpush1.bf16.msra.mxu0 %v1127_v12  ;;  %p1272_p4 = scmp.ne.s32.totalorder %s1600_s5, %s1271_s24  ;;  %s1275_s26 = sshll.u32 %s1356_s25, 4  ;;  %s1276_s26 = int_to_ptr.vmem [resolvable:$false] %s1275_s26 }
  0x5e   : > { %1091 = vmatprep.subr.mxu0 %v1347_v0  ;;  %s1277_s19 = scalar_lea.vmem %s1276_s26, 256  ;;  %p1278_p10 = scmp.lt.s32.totalorder %s1600_s5, %s1276_s26 }
  0x5f   : > { %p1273_p6 = pnand %p1272_p4, %p1463_p12  ;;  %p1279_p13 = scmp.lt.s32.totalorder %s1277_s19, %s1271_s24 }
  0x60   : > { %1048 = vmatmul.mubr.msk.f32.vlgmr.msra.gmra.mrb[0].mxu0 %vm183_vm0, %v174_v13 }
  0x61   : > { %1093 = vmatprep.mubr.msk.f32.mxu0 %vm1348_vm1, %v1347_v0  ;;  %p1274_p8 = pneg %p1273_p6  ;;  %p1280_p3 = por %p1279_p13, %p1278_p10 }
  0x63   : > { %p1281_p7 = pnand %p1280_p3, %p1274_p8 }
 0x133   : > { %v253_v14 = vpop.f32.mrb[0].mxu0 }
 0x134   : > { %427 = vrot.lane.b32.xlu1 %v253_v14, %s1349_s15  ;;  %264 = vrot.lane.b32.xlu0 %v253_v14, %s1350_s17  ;;  %v1531_v15 = vpop.f32.mrb[1].mxu0 }
 0x138   : > { %596 = vrot.lane.b32.xlu1 %v253_v14, %s1351_s27  ;;  %429 = vrot.lane.b32.xlu0 %v253_v14, %s1352_s22 }
 0x13c   : > { %762 = vrot.lane.b32.xlu1 %v253_v14, %s1353_s23  ;;  %594 = vrot.lane.b32.xlu0 %v253_v14, %s1354_s28 }
 0x140   : > { %760 = vrot.lane.b32.xlu0 %v253_v14, %s1355_s30 }
 0x1a6   : > { %v428_v16 = vpop.permute.xlu1 %427  ;;  %v265_v17 = vpop.permute.xlu0 %264 }
 0x1a7   : > { %1082 = vmatpush3.xpose.msk.msra.mxu1 %vm266_vm2, %v265_v17 }
 0x1a8   : > { %1086 = vmatprep.subr.mxu1 %v1347_v0 }
 0x1aa   : > { %1084 = vmatmul.mubr.msk.f32.vlgmr.msra.gmra.mrb[0].mxu1 %vm266_vm2, %v253_v14  ;;  %v430_v18 = vpop.permute.xlu0 %429  ;;  %v597_v19 = vpop.permute.xlu1 %596 }
 0x1ab   : > { %1087 = vmatpush3.msra.mxu1 %v1531_v15  ;;  %1092 = vmatpush3.xpose.msk.msra.mxu0 %vm266_vm2, %v430_v18 }
 0x1ac   : > { %1101 = vmatprep.subr.mxu0 %v1347_v0  ;;  %1088 = vmatprep.mubr.msk.f32.mxu1 %vm1348_vm1, %v1347_v0 }
 0x1ad   : > { %1096 = vmatprep.subr.mxu1 %v1347_v0 }
 0x1ae   : > { %1094 = vmatmul.mubr.msk.f32.vlgmr.msra.gmra.mrb[2].mxu0 %vm266_vm2, %v428_v16  ;;  %v595_v20 = vpop.permute.xlu0 %594  ;;  %v763_v21 = vpop.permute.xlu1 %762 }
 0x1af   : > { %1102 = vmatpush3.xpose.msk.msra.mxu0 %vm266_vm2, %v597_v19  ;;  %1103 = vmatprep.mubr.msk.f32.mxu0 %vm1348_vm1, %v1347_v0 }
 0x1b0   : > { %1111 = vmatprep.subr.mxu0 %v1347_v0 }
 0x1b2   : > { %1104 = vmatmul.mubr.msk.f32.vlgmr.msra.gmra.mrb[4].mxu0 %vm266_vm2, %v595_v20  ;;  %v761_v22 = vpop.permute.xlu0 %760 }
 0x1b3   : > { %1112 = vmatpush3.xpose.msk.msra.mxu0 %vm266_vm2, %v763_v21  ;;  %1113 = vmatprep.mubr.msk.f32.mxu0 %vm1348_vm1, %v1347_v0 }
 0x1b6   : > { %1114 = vmatmul.mubr.msk.f32.vlgmr.msra.gmra.mrb[6].mxu0 %vm266_vm2, %v761_v22 }
 0x27d   : > { %v337_v26 = vpop.f32.mrb[0].mxu1 }
 0x27e   : > { %v341_v27 = vsel %vm262_vm3, %v337_v26, -inf  ;;  %v1085_v28 = vpop.f32.mrb[1].mxu1 }
 0x27f   : > { %v343_v29 = vsel %vm342_vm4, %v341_v27, -inf }
 0x280   : > { %344 = vmax.xlane.f32.xlu1 %v343_v29 }
 0x281   : > { %v501_v30 = vpop.f32.mrb[2].mxu0 }
 0x282   : > { %v505_v31 = vsel %vm262_vm3, %v501_v30, -inf  ;;  %v1095_v32 = vpop.f32.mrb[3].mxu0 }
 0x283   : > { %v506_v33 = vsel %vm342_vm4, %v505_v31, -inf }
 0x284   : > { %507 = vmax.xlane.f32.xlu0 %v506_v33 }
 0x285   : > { %v668_v34 = vpop.f32.mrb[4].mxu0 }
 0x286   : > { %v672_v35 = vsel %vm262_vm3, %v668_v34, -inf  ;;  %v1105_v36 = vpop.f32.mrb[5].mxu0 }
 0x287   : > { %v673_v37 = vsel %vm342_vm4, %v672_v35, -inf }
 0x288   : > { %674 = vmax.xlane.f32.xlu0 %v673_v37 }
 0x289   : > { %v834_v38 = vpop.f32.mrb[6].mxu0 }
 0x28a   : > { %v838_v39 = vsel %vm262_vm3, %v834_v38, -inf  ;;  %v1115_v40 = vpop.f32.mrb[7].mxu0 }
 0x28b   : > { %v839_v41 = vsel %vm342_vm4, %v838_v39, -inf }
 0x28c   : > { %840 = vmax.xlane.f32.xlu1 %v839_v41 }
 0x30d   : > { %v345_v42 = vpop.xlane.xlu1 %344 }
 0x30e   : > { %v346_v43 = vsub.f32 %v341_v27, %v345_v42 }
 0x310   : > { %v347_v44 = vmul.f32 1.442695, %v346_v43 }
 0x311   : > { %v508_v45 = vpop.xlane.xlu0 %507 }
 0x312   : > { %1197 = vpow2.f32 %v347_v44  ;;  %v509_v46 = vsub.f32 %v505_v31, %v508_v45 }
 0x314   : > { %v510_v47 = vmul.f32 1.442695, %v509_v46 }
 0x315   : > { %v675_v48 = vpop.xlane.xlu0 %674 }
 0x316   : > { %1199 = vpow2.f32 %v510_v47  ;;  %v676_v49 = vsub.f32 %v672_v35, %v675_v48 }
 0x318   : > { %v677_v50 = vmul.f32 1.442695, %v676_v49 }
 0x319   : > { %v841_v57 = vpop.xlane.xlu1 %840 }
 0x31a   : > { %1201 = vpow2.f32 %v677_v50  ;;  %v842_v58 = vsub.f32 %v838_v39, %v841_v57 }
 0x31c   : > { %v1198_v51 = vpop.eup %1197  ;;  %v843_v59 = vmul.f32 1.442695, %v842_v58 }
 0x31d   : > { %v349_v52 = vsel %vm342_vm4, %v1198_v51, 0.0 }
 0x31e   : > { %350 = vadd.xlane.f32.xlu0 %v349_v52  ;;  %1203 = vpow2.f32 %v843_v59 }
 0x320   : > { %v1200_v53 = vpop.eup %1199 }
 0x321   : > { %v512_v54 = vsel %vm342_vm4, %v1200_v53, 0.0 }
 0x322   : > { %513 = vadd.xlane.f32.xlu1 %v512_v54 }
 0x324   : > { %v1202_v55 = vpop.eup %1201 }
 0x325   : > { %v679_v56 = vsel %vm342_vm4, %v1202_v55, 0.0 }
 0x326   : > { %680 = vadd.xlane.f32.xlu0 %v679_v56 }
 0x328   : > { %v1204_v60 = vpop.eup %1203 }
 0x329   : > { %v845_v61 = vsel %vm342_vm4, %v1204_v60, 0.0 }
 0x333   : > { %684 = vrot.lane.b32.xlu1 %v1531_v15, %s1354_s28 }
 0x33c   : > { %518 = vrot.lane.b32.xlu0 %v1531_v15, %s1349_s15 }
 0x357   : > { %846 = vadd.xlane.f32.xlu1 %v845_v61 }
 0x368   : > { %850 = vrot.lane.b32.xlu1 %v1531_v15, %s1355_s30 }
 0x3ab   : > { %v351_v62 = vpop.xlane.xlu0 %350 }
 0x3ac   : > { %1205 = vrcp.f32 %v351_v62 }
 0x3af   : > { %v514_v63 = vpop.xlane.xlu1 %513 }
 0x3b0   : > { %1207 = vrcp.f32 %v514_v63 }
 0x3b3   : > { %v681_v1 = vpop.xlane.xlu0 %680  ;;  %v685_v7 = vpop.permute.xlu1 %684 }
 0x3b4   : > { %1209 = vrcp.f32 %v681_v1 }
 0x3b6   : > { %v1206_v2 = vpop.eup %1205 }
 0x3b7   : > { %v353_v3 = vmul.f32 %v1206_v2, %v1198_v51  ;;  %v519_v4 = vpop.permute.xlu0 %518 }
 0x3b9   : > { %1089 = vmatmul.mubr.msk.f32.vlgmr.msra.gmra.mrb[2].mxu1 %vm342_vm4, %v353_v3 }
 0x3ba   : > { %v1208_v5 = vpop.eup %1207  ;;  %1097 = vmatpush3.msra.mxu1 %v519_v4  ;;  %1098 = vmatprep.mubr.msk.f32.mxu1 %vm1348_vm1, %v1347_v0 }
 0x3bb   : > { %v516_v6 = vmul.f32 %v1208_v5, %v1200_v53  ;;  %1106 = vmatprep.subr.mxu1 %v1347_v0 }
 0x3bd   : > { %1099 = vmatmul.mubr.msk.f32.vlgmr.msra.gmra.mrb[4].mxu1 %vm342_vm4, %v516_v6 }
 0x3be   : > { %v1210_v8 = vpop.eup %1209  ;;  %1107 = vmatpush3.msra.mxu1 %v685_v7  ;;  %1108 = vmatprep.mubr.msk.f32.mxu1 %vm1348_vm1, %v1347_v0 }
 0x3bf   : > { %v683_v9 = vmul.f32 %v1210_v8, %v1202_v55  ;;  %1116 = vmatprep.subr.mxu1 %v1347_v0 }
 0x3c1   : > { %1109 = vmatmul.mubr.msk.f32.vlgmr.msra.gmra.mrb[6].mxu1 %vm342_vm4, %v683_v9 }
 0x3c2   : > { %1118 = vmatprep.mubr.msk.f32.mxu1 %vm1348_vm1, %v1347_v0 }
 0x3e4   : > { %v847_v10 = vpop.xlane.xlu1 %846 }
 0x3e5   : > { %1211 = vrcp.f32 %v847_v10 }
 0x3e8   : > { %v851_v11 = vpop.permute.xlu1 %850 }
 0x3e9   : > { %1117 = vmatpush3.msra.mxu1 %v851_v11 }
 0x3ef   : > { %v1212_v12 = vpop.eup %1211 }
 0x3f0   : > { %v849_v13 = vmul.f32 %v1212_v12, %v1204_v60 }
 0x3f2   : > { %1119 = vmatmul.mubr.msk.f32.vlgmr.msra.gmra.mrb[8].mxu1 %vm342_vm4, %v849_v13 }
 0x48c   : > { %v423_v14 = vpop.f32.mrb[2].mxu1 }
 0x48d   : > { %v1090_v15 = vpop.f32.mrb[3].mxu1 }
 0x490   : > { %v590_v16 = vpop.f32.mrb[4].mxu1 }
 0x491   : > { %927 = vrot.lane.b32.xlu0 %v590_v16, %s1353_s23  ;;  %v1100_v17 = vpop.f32.mrb[5].mxu1 }
 0x494   : > { %v756_v18 = vpop.f32.mrb[6].mxu1 }
 0x495   : > { %931 = vrot.lane.b32.xlu1 %v756_v18, %s1351_s27  ;;  %v1110_v0 = vpop.f32.mrb[7].mxu1 }
 0x4c5   : > { %v922_v19 = vpop.f32.mrb[8].mxu1 }
 0x4c6   : > { %935 = vrot.lane.b32.xlu0 %v922_v19, %s1352_s22  ;;  %v1120_v20 = vpop.f32.mrb[9].mxu1 }
 0x503   : > { %v928_v21 = vpop.permute.xlu0 %927 }
 0x504   : > { %v938_v23 = vsel %vm266_vm2, %v423_v14, %v928_v21 }
 0x507   : > { %v932_v22 = vpop.permute.xlu1 %931 }
 0x508   : > { %v939_v24 = vsel %vm183_vm0, %v938_v23, %v932_v22 }
 0x538   : > { %v936_v25 = vpop.permute.xlu0 %935 }
 0x539   : > { %v941_v26 = vsel %vm940_vm5, %v939_v24, %v936_v25 }
 0x53a   : > { %943 = vst.msk [vmem:[%s173_s4] sm:$0xff] %vm942_vm6, %v941_v26 }
 0x53b   : > { %1284 = shalt.err (!%p1281_p7)
}
 0x53c   : > { %s1285_s20 = scalar_lea.hbm %s1598_s18, 128  ;;  %s1289_s17 = scalar_lea.hbm %s1644_s2, 256 }
 0x53d   : > { %p1286_p9 = scmp.ne.s32.totalorder %s1598_s18, %s1285_s20  ;;  %p1290_p0 = scmp.lt.u32.totalorder %s1598_s18, %s1644_s2 }
 0x53e   : > { %p1291_p11 = scmp.lt.u32.totalorder %s1289_s17, %s1285_s20  ;;  %p1293_p4 = scmp.lt.u32.totalorder %s1285_s20, %s1598_s18 }
 0x53f   : > { %p1287_p2 = pnand %p1286_p9, %p1463_p12 }
 0x540   : > { %p1292_p1 = por %p1291_p11, %p1290_p0 }
 0x541   : > { %p1288_p5 = pneg %p1287_p2 }
 0x542   : > { %p1294_p6 = por %p1293_p4, %p1292_p1 }
 0x544   : > { %p1295_p8 = pnand %p1294_p6, %p1288_p5 }
 0x546   : > { %1298 = shalt.err (!%p1295_p8)
}
 0x547   : > { %1135 = dma.vmem_to_hbm [thread:$0]  (%p1463_p12), %s1600_s5, 128, %s1598_s18, %s945_s13  }
 0x548 PF: > { %s970_s23 = sand.u32 1, %s1329_s9   ;;  %p1659_p10 = scmp.ne.s32.totalorder %s1649_s16, 0 }
 0x549   : > { %p1660_p13 = scmp.ge.s32.totalorder %s1341_s12, 2  ;;  %s971_s28 = scalar_lea.sflag [#allocation4], %s970_s23 }
 0x54b   : > { %p1146_p3 = pnand %p1660_p13, %p1659_p10 }
 0x54d   : > { %1324 = dma.done.wait (!%p1146_p3), %s971_s28, 128  }
 0x54e   : > { %1326 = vsyncadd (!%p1146_p3), %s971_s28, 4294967168  ;;  %p16_p7 = scmp.ge.s32.totalorder %s1428_s21, 4   ;;  %s1661_s9 = smov %s1333_s10 }
 0x54f   : > { %s1662_s10 = smov %s1337_s11  ;;  %s1663_s11 = smov %s1459_s8 }
 0x550   : > { %s1664_s12 = smov %s1428_s21  ;;  %18 = sbr.rel (!%p16_p7) target bundleno = 6 (0x6), region = 77 }
 0x557   :  { %976 = vsyncpa [#allocation3], 1 }
 0x558   :  { %978 = vsyncpa [#allocation3 + $0x1], 1 }
 0x559   :  { %979 = vsyncpa [#allocation6], 1 }
 0x55a   :  { %980 = vsyncpa [#allocation4], 1 }
 0x55b   :  { %982 = vsyncpa [#allocation4 + $0x1], 1 }

</bundles_post_ra>
